<compile_context>
chip_gen: v7x
topology: tpu7x:2x2x1
jax: 0.10.0
libtpu: 0.0.40
codegen_flags: <defaults>
</compile_context>

<pallas_src>
import functools

import jax
import jax.numpy as jnp
from jax.experimental import pallas as pl
from jax.experimental.pallas import tpu as pltpu


def _triplet_loss_kernel(a_ref, p_ref, n_ref, o_ref, *, margin):
    # Per-tile hot path: VPU elementwise products, XLU axis-0 reduces, EUP
    # sqrt, relu.  Kernel is HBM-bandwidth bound; compute rides free slots.
    eps = jnp.float32(1e-6)

    a = a_ref[...].astype(jnp.float32)
    p = p_ref[...].astype(jnp.float32)
    n = n_ref[...].astype(jnp.float32)

    # Reductions along dim=0 (keepdims -> (1, TILE_N), stays 2-D / lane-dense).
    dot_ap = jnp.sum(a * p, axis=0, keepdims=True)
    dot_an = jnp.sum(a * n, axis=0, keepdims=True)
    sum_aa = jnp.sum(a * a, axis=0, keepdims=True)
    sum_pp = jnp.sum(p * p, axis=0, keepdims=True)
    sum_nn = jnp.sum(n * n, axis=0, keepdims=True)

    # PyTorch CosineSimilarity: x1.x2 / max(||x1||*||x2||, eps).
    # Clamp the *product of norms* (not squared sums) so large-magnitude /
    # large-H inputs do not overflow f32.
    norm_a = jnp.sqrt(sum_aa)
    cos_ap = dot_ap / jnp.maximum(norm_a * jnp.sqrt(sum_pp), eps)
    cos_an = dot_an / jnp.maximum(norm_a * jnp.sqrt(sum_nn), eps)

    # losses = relu((1 - cos_ap) - (1 - cos_an) + margin)
    #        = relu(cos_an - cos_ap + margin)
    o_ref[...] = jnp.maximum(
        cos_an - cos_ap + jnp.float32(margin), jnp.float32(0.0)
    )


def _round_up(x, m):
    return ((x + m - 1) // m) * m


def _triplet_loss_jax(anchor, positive, negative, margin, size_average):
    # Fused XLA fallback for the pathological large-H corner where even a
    # single 128-lane tile would not fit the VMEM budget.
    eps = jnp.float32(1e-6)
    a = anchor.astype(jnp.float32)
    p = positive.astype(jnp.float32)
    ng = negative.astype(jnp.float32)

    def cos(x, y):
        num = jnp.sum(x * y, axis=0)
        den = jnp.maximum(
            jnp.sqrt(jnp.sum(x * x, axis=0)) * jnp.sqrt(jnp.sum(y * y, axis=0)),
            eps,
        )
        return num / den

    losses = jnp.maximum(cos(a, ng) - cos(a, p) + jnp.float32(margin), 0.0)
    return jnp.mean(losses) if size_average else jnp.sum(losses)


def triplet_loss(anchor, positive, negative, margin, size_average=True,
                 tile_n=None):
    assert anchor.shape == positive.shape == negative.shape
    assert anchor.dtype == positive.dtype == negative.dtype
    assert anchor.ndim == 2
    h, n = anchor.shape
    itemsize = jnp.dtype(anchor.dtype).itemsize

    # --- per-generation VMEM capacity (v5e/v6e 128 MiB, v7x 64 MiB per TC).
    try:
        vmem_cap = int(pltpu.get_tpu_info().vmem_capacity_bytes)
    except Exception:
        vmem_cap = 64 * 1024 * 1024  # smallest of the fleet (v7x per-TC)

    # Per-column VMEM cost: 3 double-buffered input tiles in their native
    # dtype + the f32 working set (3 f32 casts + ~4 elementwise temporaries
    # the compiler may materialize).  Budget ~55% of capacity so the raised
    # vmem_limit still has headroom for output buffers / compiler scratch.
    bytes_per_col = 3 * 2 * h * itemsize + 7 * h * 4
    vmem_budget = int(vmem_cap * 0.55)
    tile_cap = (vmem_budget // bytes_per_col) // 128 * 128

    if tile_cap < 128:
        # Large-H corner: gate instead of blowing the scoped VMEM limit.
        # TODO(synk): H-tiled 2-D grid ("parallel","arbitrary") with partial
        # sums in VMEM scratch for this regime.
        return _triplet_loss_jax(anchor, positive, negative, margin,
                                 size_average)

    # Target ~4 MiB of input per grid step so the ~0.35 us per-step pipeline
    # overhead is negligible vs the HBM transfer time of the step.
    target_step_bytes = 4 * 1024 * 1024
    tile_target = _round_up(max(128, target_step_bytes // (3 * h * itemsize)),
                            128)

    tile_n_eff = min(tile_target, tile_cap, _round_up(n, 128))
    if tile_n is not None:
        tile_n_eff = min(tile_n_eff, max(128, _round_up(int(tile_n), 128)))
    num_tiles = (n + tile_n_eff - 1) // tile_n_eff

    # Explicit scoped-VMEM limit sized to this kernel's footprint (never more
    # than ~80% of physical so we stay safe on v7x's 64 MiB).
    vmem_limit = min(int(vmem_cap * 0.8),
                     max(bytes_per_col * tile_n_eff + (4 << 20), 32 << 20))

    kernel = functools.partial(_triplet_loss_kernel, margin=float(margin))
    in_spec = pl.BlockSpec((h, tile_n_eff), lambda j: (0, j))

    cost = pl.CostEstimate(
        flops=10 * h * n,                              # 5 mul + 5 add / elem
        transcendentals=3 * n,                         # 3 sqrt per column
        bytes_accessed=3 * h * n * itemsize + 4 * n,   # 3 reads + f32 out
    )

    losses = pl.pallas_call(
        kernel,
        out_shape=jax.ShapeDtypeStruct((1, n), jnp.float32),
        grid=(num_tiles,),
        in_specs=[in_spec, in_spec, in_spec],
        out_specs=pl.BlockSpec((1, tile_n_eff), lambda j: (0, j)),
        compiler_params=pltpu.CompilerParams(
            dimension_semantics=("parallel",),
            vmem_limit_bytes=int(vmem_limit),
        ),
        cost_estimate=cost,
    )(anchor, positive, negative)

    # Tiny final reduction in plain JAX (keeps the grid axis parallel /
    # megacore-splittable instead of a serialized scalar accumulator).
    valid = losses[0, :n]
    return jnp.mean(valid) if size_average else jnp.sum(valid)


def _reference(anchor, positive, negative, margin, size_average=True):
    eps = 1e-6
    a = anchor.astype(jnp.float32)
    p = positive.astype(jnp.float32)
    ng = negative.astype(jnp.float32)

    def cos(x1, x2):
        num = jnp.sum(x1 * x2, axis=0)
        den = jnp.maximum(
            jnp.linalg.norm(x1, axis=0) * jnp.linalg.norm(x2, axis=0), eps
        )
        return num / den

    dp = 1.0 - cos(a, p)
    dn = 1.0 - cos(a, ng)
    losses = jnp.maximum(dp - dn + margin, 0.0)
    return losses.mean() if size_average else losses.sum()


if __name__ == "__main__":
    margin = 0.2
    key = jax.random.PRNGKey(0)

    # Test 1: aligned shapes, mean reduction (single tile).
    H, N = 32, 128
    ka, kp, kn = jax.random.split(key, 3)
    anchor = jax.random.normal(ka, (H, N), dtype=jnp.float32)
    positive = jax.random.normal(kp, (H, N), dtype=jnp.float32)
    negative = jax.random.normal(kn, (H, N), dtype=jnp.float32)

    out = triplet_loss(anchor, positive, negative, margin, size_average=True)
    out = jax.block_until_ready(out)
    ref = _reference(anchor, positive, negative, margin, size_average=True)
    assert jnp.allclose(out, ref, atol=1e-5, rtol=1e-5), (out, ref)

    # Test 2: non-aligned N (partial block handled by Pallas, no jnp.pad),
    # sum reduction.
    H2, N2 = 20, 300
    k2 = jax.random.PRNGKey(1)
    ka2, kp2, kn2 = jax.random.split(k2, 3)
    anchor2 = jax.random.normal(ka2, (H2, N2), dtype=jnp.float32)
    positive2 = jax.random.normal(kp2, (H2, N2), dtype=jnp.float32)
    negative2 = jax.random.normal(kn2, (H2, N2), dtype=jnp.float32)

    out2 = triplet_loss(anchor2, positive2, negative2, margin,
                        size_average=False)
    out2 = jax.block_until_ready(out2)
    ref2 = _reference(anchor2, positive2, negative2, margin,
                      size_average=False)
    assert jnp.allclose(out2, ref2, atol=1e-4, rtol=1e-5), (out2, ref2)

    # Test 3: multi-tile grid with a partial last tile (tile_n upper-bound
    # forced small to exercise the pipelined path), mean reduction.
    H3, N3 = 16, 2500
    k3 = jax.random.PRNGKey(2)
    ka3, kp3, kn3 = jax.random.split(k3, 3)
    anchor3 = jax.random.normal(ka3, (H3, N3), dtype=jnp.float32)
    positive3 = jax.random.normal(kp3, (H3, N3), dtype=jnp.float32)
    negative3 = jax.random.normal(kn3, (H3, N3), dtype=jnp.float32)

    out3 = triplet_loss(anchor3, positive3, negative3, margin,
                        size_average=True, tile_n=1024)
    out3 = jax.block_until_ready(out3)
    ref3 = _reference(anchor3, positive3, negative3, margin,
                      size_average=True)
    assert jnp.allclose(out3, ref3, atol=1e-5, rtol=1e-5), (out3, ref3)

    print("KERNEL_OK")
</pallas_src>

<mosaic_0001>
module attributes {stable_mosaic.version = 11 : i64} {
  func.func @_triplet_loss_kernel(%arg0: i32, %arg1: memref<32x128xf32, #tpu.memory_space<vmem>>, %arg2: memref<32x128xf32, #tpu.memory_space<vmem>>, %arg3: memref<32x128xf32, #tpu.memory_space<vmem>>, %arg4: memref<1x128xf32, #tpu.memory_space<vmem>>) attributes {dimension_semantics = [#tpu.dimension_semantics<parallel>], iteration_bounds = array<i64: 1>, scalar_prefetch = 0 : i64, scratch_operands = 0 : i64, tpu.core_type = #tpu.core_type<tc>, window_params = [{transform_indices = @transform_0, window_bounds = array<i64: 32, 128>}, {transform_indices = @transform_1, window_bounds = array<i64: 32, 128>}, {transform_indices = @transform_2, window_bounds = array<i64: 32, 128>}, {transform_indices = @transform_3, window_bounds = array<i64: 1, 128>}]} {
    %c0 = arith.constant 0 : index
    %c0_0 = arith.constant 0 : index
    %0 = vector.load %arg1[%c0, %c0_0] : memref<32x128xf32, #tpu.memory_space<vmem>>, vector<32x128xf32>
    %c0_1 = arith.constant 0 : index
    %c0_2 = arith.constant 0 : index
    %1 = vector.load %arg2[%c0_1, %c0_2] : memref<32x128xf32, #tpu.memory_space<vmem>>, vector<32x128xf32>
    %c0_3 = arith.constant 0 : index
    %c0_4 = arith.constant 0 : index
    %2 = vector.load %arg3[%c0_3, %c0_4] : memref<32x128xf32, #tpu.memory_space<vmem>>, vector<32x128xf32>
    %3 = arith.mulf %0, %1 : vector<32x128xf32>
    %cst = arith.constant dense<0.000000e+00> : vector<128xf32>
    %4 = vector.multi_reduction <add>, %3, %cst [0] : vector<32x128xf32> to vector<128xf32>
    %5 = vector.shape_cast %4 : vector<128xf32> to vector<1x128xf32>
    %6 = arith.mulf %0, %2 : vector<32x128xf32>
    %cst_5 = arith.constant dense<0.000000e+00> : vector<128xf32>
    %7 = vector.multi_reduction <add>, %6, %cst_5 [0] : vector<32x128xf32> to vector<128xf32>
    %8 = vector.shape_cast %7 : vector<128xf32> to vector<1x128xf32>
    %9 = arith.mulf %0, %0 : vector<32x128xf32>
    %cst_6 = arith.constant dense<0.000000e+00> : vector<128xf32>
    %10 = vector.multi_reduction <add>, %9, %cst_6 [0] : vector<32x128xf32> to vector<128xf32>
    %11 = vector.shape_cast %10 : vector<128xf32> to vector<1x128xf32>
    %12 = arith.mulf %1, %1 : vector<32x128xf32>
    %cst_7 = arith.constant dense<0.000000e+00> : vector<128xf32>
    %13 = vector.multi_reduction <add>, %12, %cst_7 [0] : vector<32x128xf32> to vector<128xf32>
    %14 = vector.shape_cast %13 : vector<128xf32> to vector<1x128xf32>
    %15 = arith.mulf %2, %2 : vector<32x128xf32>
    %cst_8 = arith.constant dense<0.000000e+00> : vector<128xf32>
    %16 = vector.multi_reduction <add>, %15, %cst_8 [0] : vector<32x128xf32> to vector<128xf32>
    %17 = vector.shape_cast %16 : vector<128xf32> to vector<1x128xf32>
    %18 = math.sqrt %11 : vector<1x128xf32>
    %19 = math.sqrt %14 : vector<1x128xf32>
    %20 = arith.mulf %18, %19 : vector<1x128xf32>
    %cst_9 = arith.constant 9.99999997E-7 : f32
    %21 = vector.broadcast %cst_9 : f32 to vector<1x128xf32>
    %22 = arith.maximumf %20, %21 : vector<1x128xf32>
    %23 = arith.divf %5, %22 : vector<1x128xf32>
    %24 = math.sqrt %17 : vector<1x128xf32>
    %25 = arith.mulf %18, %24 : vector<1x128xf32>
    %cst_10 = arith.constant 9.99999997E-7 : f32
    %26 = vector.broadcast %cst_10 : f32 to vector<1x128xf32>
    %27 = arith.maximumf %25, %26 : vector<1x128xf32>
    %28 = arith.divf %8, %27 : vector<1x128xf32>
    %29 = arith.subf %28, %23 : vector<1x128xf32>
    %cst_11 = arith.constant 2.000000e-01 : f32
    %30 = vector.broadcast %cst_11 : f32 to vector<1x128xf32>
    %31 = arith.addf %29, %30 : vector<1x128xf32>
    %cst_12 = arith.constant 0.000000e+00 : f32
    %32 = vector.broadcast %cst_12 : f32 to vector<1x128xf32>
    %33 = arith.maximumf %31, %32 : vector<1x128xf32>
    %c0_13 = arith.constant 0 : index
    %c0_14 = arith.constant 0 : index
    %34 = vector.load %arg4[%c0_13, %c0_14] : memref<1x128xf32, #tpu.memory_space<vmem>>, vector<1x128xf32>
    tpu.vector_store %arg4[%c0_13, %c0_14], %33 {strides = array<i32>} : memref<1x128xf32, #tpu.memory_space<vmem>>, vector<1x128xf32>,
    return
  }
  func.func @transform_0(%arg0: i32) -> (i32, i32) {
    %c0_i32 = arith.constant 0 : i32
    %c0_i32_0 = arith.constant 0 : i32
    return %c0_i32, %arg0 : i32, i32
  }
  func.func @transform_1(%arg0: i32) -> (i32, i32) {
    %c0_i32 = arith.constant 0 : i32
    %c0_i32_0 = arith.constant 0 : i32
    return %c0_i32, %arg0 : i32, i32
  }
  func.func @transform_2(%arg0: i32) -> (i32, i32) {
    %c0_i32 = arith.constant 0 : i32
    %c0_i32_0 = arith.constant 0 : i32
    return %c0_i32, %arg0 : i32, i32
  }
  func.func @transform_3(%arg0: i32) -> (i32, i32) {
    %c0_i32 = arith.constant 0 : i32
    %c0_i32_0 = arith.constant 0 : i32
    return %c0_i32, %arg0 : i32, i32
  }
}

</mosaic_0001>

<bundles_post_ra>
// kernel: tpu_custom_call.1
= control target key start
LH: loop header
LB: loop body
LE: loop exit
PB: predicated region body
PF: predicated region fallthrough
CT: control target
= control target key end

     0   :  { %8 = vsyncpa [#allocation3], 0  ;;  %s382_s0 = inlined_call_operand.hbm [shape: f32[32,128], index: 0, kind: input, shape index: {}]   ;;  %s383_s1 = inlined_call_operand.hbm [shape: f32[32,128], index: 1, kind: input, shape index: {}]   ;;  %s384_s2 = inlined_call_operand.hbm [shape: f32[32,128], index: 2, kind: input, shape index: {}]   ;;  %s385_s3 = inlined_call_operand.hbm [shape: f32[1,128], index: 3, kind: output, shape index: {}]  }
   0x1   :  { %9 = vsyncpa [#allocation6], 0 }
   0x2   :  { %10 = vsyncpa [#allocation4], 0  ;;  %s292_s12 = smov [#allocation5]   ;;  %s293_s14 = smov [#allocation2]  }
   0x3   :  { %s28_s13 = sshll.u32 %s292_s12, 4  ;;  %s16_s15 = sshll.u32 %s293_s14, 4  ;;  %s29_s13 = int_to_ptr.vmem [resolvable:$true] %s28_s13  ;;  %s318_s15 = int_to_ptr.vmem [resolvable:$true] %s16_s15 }
   0x4   :  { %s198_s18 = scalar_lea.hbm %s383_s1, 512 }
   0x5   :  { %p199_p0 = scmp.ne.s32.totalorder %s383_s1, %s198_s18  ;;  %p202_p1 = scmp.lt.u32.totalorder %s198_s18, %s383_s1 }
   0x7   :  { %p204_p2 = pnand %p202_p1, %p199_p0 }
   0x9   :  { %207 = shalt.err (!%p204_p2)
}
   0xa   :  { %s208_s23 = scalar_lea.vmem %s29_s13, 512  ;;  %p213_p4 = scmp.lt.s32.totalorder %s29_s13, %s29_s13 }
   0xb   :  { %p209_p3 = scmp.ne.s32.totalorder %s29_s13, %s208_s23  ;;  %p214_p5 = scmp.lt.s32.totalorder %s208_s23, %s208_s23 }
   0xd   :  { %p215_p6 = por %p214_p5, %p213_p4 }
   0xf   :  { %p216_p7 = pnand %p215_p6, %p209_p3 }
  0x11   :  { %219 = shalt.err (!%p216_p7)
}
  0x12   :  { %s294_s24 = smov 128   ;;  %s295_s25 = smov 8  }
  0x13   :  { %34 = dma.hbm_to_vmem [thread:$0]  %s383_s1, 512, %s29_s13, [#allocation6], %s294_s24, %s294_s24, %s295_s25  }
  0x14   :  { %s220_s30 = scalar_lea.hbm %s382_s0, 512 }
  0x15   :  { %p221_p8 = scmp.ne.s32.totalorder %s382_s0, %s220_s30  ;;  %p224_p9 = scmp.lt.u32.totalorder %s220_s30, %s382_s0 }
  0x17   :  { %p226_p10 = pnand %p224_p9, %p221_p8 }
  0x19   :  { %229 = shalt.err (!%p226_p10)
}
  0x1a   :  { %s230_s8 = scalar_lea.vmem %s318_s15, 512  ;;  %p235_p12 = scmp.lt.s32.totalorder %s318_s15, %s318_s15 }
  0x1b   :  { %p231_p11 = scmp.ne.s32.totalorder %s318_s15, %s230_s8  ;;  %p236_p13 = scmp.lt.s32.totalorder %s230_s8, %s230_s8 }
  0x1d   :  { %p237_p0 = por %p236_p13, %p235_p12 }
  0x1f   :  { %p238_p1 = pnand %p237_p0, %p231_p11 }
  0x21   :  { %241 = shalt.err (!%p238_p1)
}
  0x22   :  { %22 = dma.hbm_to_vmem [thread:$0]  %s382_s0, 512, %s318_s15, [#allocation3], %s294_s24, %s294_s24, %s295_s25  }
  0x23   :  { %s296_s10 = smov [#allocation7]   ;;  %s242_s14 = scalar_lea.hbm %s384_s2, 512 }
  0x24   :  { %s40_s11 = sshll.u32 %s296_s10, 4  ;;  %p243_p2 = scmp.ne.s32.totalorder %s384_s2, %s242_s14  ;;  %s41_s11 = int_to_ptr.vmem [resolvable:$true] %s40_s11 }
  0x25   :  { %p246_p3 = scmp.lt.u32.totalorder %s242_s14, %s384_s2 }
  0x27   :  { %p248_p4 = pnand %p246_p3, %p243_p2 }
  0x29   :  { %251 = shalt.err (!%p248_p4)
}
  0x2a   :  { %s252_s20 = scalar_lea.vmem %s41_s11, 512  ;;  %p257_p6 = scmp.lt.s32.totalorder %s41_s11, %s41_s11 }
  0x2b   :  { %p253_p5 = scmp.ne.s32.totalorder %s41_s11, %s252_s20  ;;  %p258_p7 = scmp.lt.s32.totalorder %s252_s20, %s252_s20 }
  0x2d   :  { %p259_p8 = por %p258_p7, %p257_p6 }
  0x2f   :  { %p260_p9 = pnand %p259_p8, %p253_p5 }
  0x31   :  { %263 = shalt.err (!%p260_p9)
}
  0x32   :  { %46 = dma.hbm_to_vmem [thread:$0]  %s384_s2, 512, %s41_s11, [#allocation6], %s294_s24, %s294_s24, %s295_s25  }
  0x33   :  { %286 = dma.done.wait [#allocation3], 512  }
  0x34   :  { %287 = vsyncadd [#allocation3], 4294966784 }
  0x35   :  { %288 = dma.done.wait [#allocation6], 1024  }
  0x36   :  { %289 = vsyncadd [#allocation6], 4294966272  ;;  %v56_v0 = vld [vmem:[#allocation2] sm:$0xff]  ;;  %v57_v1 = vld [vmem:[#allocation2 + $0x8] sm:$0xff]  ;;  %s297_s2 = smov [#allocation8]  }
  0x37   :  { %v58_v2 = vld [vmem:[#allocation2 + $0x10] sm:$0xff]  ;;  %v59_v3 = vld [vmem:[#allocation2 + $0x18] sm:$0xff]  ;;  %v60_v4 = vld [vmem:[#allocation5] sm:$0xff]  ;;  %v94_v5 = vmul.f32 %v56_v0, %v56_v0  ;;  %v95_v6 = vmul.f32 %v57_v1, %v57_v1  ;;  %s172_s21 = sshll.u32 %s297_s2, 4  ;;  %s173_s21 = int_to_ptr.vmem [resolvable:$true] %s172_s21 }
  0x38   :  { %v96_v7 = vmul.f32 %v58_v2, %v58_v2  ;;  %v61_v8 = vld [vmem:[#allocation5 + $0x8] sm:$0xff]  ;;  %v62_v9 = vld [vmem:[#allocation5 + $0x10] sm:$0xff]  ;;  %v64_v10 = vld [vmem:[#allocation7] sm:$0xff]  ;;  %v97_v12 = vmul.f32 %v59_v3, %v59_v3  ;;  %v107_v14 = vmul.f32 %v60_v4, %v60_v4  ;;  %v68_v37 = vmul.f32 %v60_v4, %v56_v0  ;;  %s264_s22 = scalar_lea.vmem %s173_s21, 16  ;;  %s268_s23 = scalar_lea.vmem %s173_s21, 32 }
  0x39   :  { %v65_v11 = vld [vmem:[#allocation7 + $0x8] sm:$0xff]  ;;  %v98_v13 = vadd.f32 %v95_v6, %v94_v5  ;;  %v63_v15 = vld [vmem:[#allocation5 + $0x18] sm:$0xff]  ;;  %v66_v16 = vld [vmem:[#allocation7 + $0x10] sm:$0xff]  ;;  %v108_v19 = vmul.f32 %v61_v8, %v61_v8  ;;  %v109_v20 = vmul.f32 %v62_v9, %v62_v9  ;;  %v120_v21 = vmul.f32 %v64_v10, %v64_v10  ;;  %p265_p10 = scmp.ne.s32.totalorder %s173_s21, %s264_s22  ;;  %p269_p11 = scmp.lt.s32.totalorder %s173_s21, %s173_s21 }
  0x3a   :  { %v67_v17 = vld [vmem:[#allocation7 + $0x18] sm:$0xff]  ;;  %v121_v22 = vmul.f32 %v65_v11, %v65_v11  ;;  %v110_v24 = vmul.f32 %v63_v15, %v63_v15  ;;  %v122_v26 = vmul.f32 %v66_v16, %v66_v16  ;;  %v69_v38 = vmul.f32 %v61_v8, %v57_v1  ;;  %p270_p12 = scmp.lt.s32.totalorder %s268_s23, %s264_s22 }
  0x3b   :  { %v99_v18 = vadd.f32 %v98_v13, %v96_v7  ;;  %v111_v25 = vadd.f32 %v108_v19, %v107_v14  ;;  %v123_v27 = vmul.f32 %v67_v17, %v67_v17  ;;  %v81_v40 = vmul.f32 %v64_v10, %v56_v0 }
  0x3c   :  { %v124_v28 = vadd.f32 %v121_v22, %v120_v21  ;;  %v82_v41 = vmul.f32 %v65_v11, %v57_v1  ;;  %v70_v47 = vmul.f32 %v62_v9, %v58_v2  ;;  %v72_v48 = vadd.f32 %v69_v38, %v68_v37  ;;  %p271_p13 = por %p270_p12, %p269_p11 }
  0x3d   :  { %v100_v23 = vadd.f32 %v99_v18, %v97_v12  ;;  %v112_v30 = vadd.f32 %v111_v25, %v109_v20  ;;  %v83_v50 = vmul.f32 %v66_v16, %v58_v2  ;;  %v71_v56 = vmul.f32 %v63_v15, %v59_v3 }
  0x3e   :  { %v125_v31 = vadd.f32 %v124_v28, %v122_v26  ;;  %v85_v51 = vadd.f32 %v82_v41, %v81_v40  ;;  %v73_v58 = vadd.f32 %v72_v48, %v70_v47  ;;  %v84_v59 = vmul.f32 %v67_v17, %v59_v3  ;;  %p272_p0 = pnand %p271_p13, %p265_p10 }
  0x3f   :  { %v101_v29 = vrot.slane %v100_v23, 4  ;;  %v113_v33 = vadd.f32 %v112_v30, %v110_v24 }
  0x40   :  { %v126_v34 = vadd.f32 %v125_v31, %v123_v27  ;;  %v86_v60 = vadd.f32 %v85_v51, %v83_v50  ;;  %v74_v63 = vadd.f32 %v73_v58, %v71_v56 }
  0x41   :  { %v102_v32 = vadd.f32 %v101_v29, %v100_v23  ;;  %v114_v36 = vrot.slane %v113_v33, 4 }
  0x42   :  { %v127_v39 = vrot.slane %v126_v34, 4  ;;  %v87_v0 = vadd.f32 %v86_v60, %v84_v59  ;;  %v75_v4 = vrot.slane %v74_v63, 4 }
  0x43   :  { %v103_v35 = vrot.slane %v102_v32, 2  ;;  %v115_v43 = vadd.f32 %v114_v36, %v113_v33 }
  0x44   :  { %v128_v44 = vadd.f32 %v127_v39, %v126_v34  ;;  %v88_v2 = vrot.slane %v87_v0, 4  ;;  %v76_v9 = vadd.f32 %v75_v4, %v74_v63 }
  0x45   :  { %v104_v42 = vadd.f32 %v103_v35, %v102_v32  ;;  %v116_v46 = vrot.slane %v115_v43, 2 }
  0x46   :  { %v129_v49 = vrot.slane %v128_v44, 2  ;;  %v89_v10 = vadd.f32 %v88_v2, %v87_v0  ;;  %v77_v17 = vrot.slane %v76_v9, 2 }
  0x47   :  { %v105_v45 = vrot.slane %v104_v42, 1  ;;  %v117_v53 = vadd.f32 %v116_v46, %v115_v43 }
  0x48   :  { %v130_v54 = vadd.f32 %v129_v49, %v128_v44  ;;  %v90_v20 = vrot.slane %v89_v10, 2  ;;  %v78_v25 = vadd.f32 %v77_v17, %v76_v9 }
  0x49   :  { %v106_v52 = vadd.f32 %v105_v45, %v104_v42  ;;  %v118_v55 = vrot.slane %v117_v53, 1 }
  0x4a   :  { %v131_v57 = vrot.slane %v130_v54, 1  ;;  %v91_v27 = vadd.f32 %v90_v20, %v89_v10  ;;  %v79_v28 = vrot.slane %v78_v25, 1 }
  0x4b   :  { %188 = vrsqrt.f32 %v106_v52  ;;  %v119_v61 = vadd.f32 %v118_v55, %v117_v53  ;;  %vm135_vm0 = vcmp.eq.f32.partialorder %v106_v52, inf  ;;  %v138_v6 = vand.u32 2147483648, %v106_v52 }
  0x4c   :  { %v132_v62 = vadd.f32 %v131_v57, %v130_v54  ;;  %vm137_vm1 = vcmp.eq.f32.partialorder %v106_v52, 0.0  ;;  %v92_v29 = vrot.slane %v91_v27, 1  ;;  %v80_v30 = vadd.f32 %v79_v28, %v78_v25 }
  0x4d   :  { %190 = vrsqrt.f32 %v119_v61  ;;  %vm142_vm2 = vcmp.eq.f32.partialorder %v119_v61, inf  ;;  %v145_v3 = vand.u32 2147483648, %v119_v61  ;;  %vm144_vm3 = vcmp.eq.f32.partialorder %v119_v61, 0.0 }
  0x4e   :  { %192 = vrsqrt.f32 %v132_v62  ;;  %vm153_vm4 = vcmp.eq.f32.partialorder %v132_v62, inf  ;;  %v156_v13 = vand.u32 2147483648, %v132_v62  ;;  %vm155_vm5 = vcmp.eq.f32.partialorder %v132_v62, 0.0 }
  0x4f   :  { %v93_v31 = vadd.f32 %v92_v29, %v91_v27 }
  0x55   :  { %v189_v1 = vpop.eup %188 }
  0x56   :  { %v134_v5 = vmul.f32 %v189_v1, %v106_v52 }
  0x57   :  { %v191_v8 = vpop.eup %190 }
  0x58   :  { %v136_v7 = vsel %vm135_vm0, %v106_v52, %v134_v5  ;;  %v193_v11 = vpop.eup %192  ;;  %v141_v12 = vmul.f32 %v191_v8, %v119_v61 }
  0x59   :  { %v139_v14 = vsel %vm137_vm1, %v138_v6, %v136_v7  ;;  %v152_v15 = vmul.f32 %v193_v11, %v132_v62 }
  0x5a   :  { %v143_v16 = vsel %vm142_vm2, %v119_v61, %v141_v12 }
  0x5b   :  { %v146_v18 = vsel %vm144_vm3, %v145_v3, %v143_v16  ;;  %v154_v19 = vsel %vm153_vm4, %v132_v62, %v152_v15 }
  0x5c   :  { %v147_v21 = vmul.f32 %v146_v18, %v139_v14  ;;  %v157_v22 = vsel %vm155_vm5, %v156_v13, %v154_v19 }
  0x5d   :  { %v158_v23 = vmul.f32 %v157_v22, %v139_v14 }
  0x5e   :  { %v148_v24 = vmax.f32 %v147_v21, 1e-06 }
  0x5f   :  { %v159_v26 = vmax.f32 %v158_v23, 1e-06 }
  0x60   :  { %194 = vrcp.f32 %v148_v24 }
  0x61   :  { %196 = vrcp.f32 %v159_v26 }
  0x6a   :  { %v195_v32 = vpop.eup %194 }
  0x6b   :  { %v197_v33 = vpop.eup %196  ;;  %v150_v34 = vmul.f32 %v195_v32, %v80_v30 }
  0x6c   :  { %v161_v35 = vmul.f32 %v197_v33, %v93_v31 }
  0x6e   :  { %v162_v36 = vsub.f32 %v161_v35, %v150_v34 }
  0x70   :  { %v163_v37 = vadd.f32 0.2, %v162_v36 }
  0x72   :  { %v164_v38 = vmax.f32 %v163_v37, 0.0 }
  0x74   :  { %165 = vst [vmem:[#allocation8] sm:$0x1] %v164_v38 }
  0x75   :  { %275 = shalt.err (!%p272_p0)
}
  0x76   :  { %s276_s26 = scalar_lea.hbm %s385_s3, 16 }
  0x77   :  { %p277_p1 = scmp.ne.s32.totalorder %s385_s3, %s276_s26  ;;  %p280_p2 = scmp.lt.u32.totalorder %s276_s26, %s385_s3 }
  0x79   :  { %p282_p3 = pnand %p280_p2, %p277_p1 }
  0x7b   :  { %285 = shalt.err (!%p282_p3)
}
  0x7c   :  { %175 = dma.vmem_to_hbm [thread:$0]  %s173_s21, 16, %s385_s3, [#allocation4]  }
  0x7d   :  { %290 = dma.done.wait [#allocation4], 16  }
  0x7e   :  { %291 = vsyncadd [#allocation4], 4294967280 }
  0x7f   :  { %179 = vsyncpa [#allocation3], 1 }
  0x80   :  { %180 = vsyncpa [#allocation6], 1 }
  0x81   :  { %181 = vsyncpa [#allocation4], 1 }

</bundles_post_ra>
